<compile_context>
chip_gen: v7x
topology: tpu7x:2x2x1
jax: 0.10.0
libtpu: 0.0.40
codegen_flags: <defaults>
</compile_context>

<pallas_src>
import math
from functools import partial

import jax
import jax.numpy as jnp
from jax.experimental import pallas as pl
from jax.experimental.pallas import tpu as pltpu

LANE = 128      # pad feature / hidden / class dims to a full vreg lane width
SUBLANE = 8     # pad the graph dim to full sublanes
NUM_LAYERS = 4


def _vmem_spec():
    return pl.BlockSpec(memory_space=pltpu.MemorySpace.VMEM)


def _pad2(w, rows, cols):
    return jnp.pad(w, ((0, rows - w.shape[0]), (0, cols - w.shape[1])))


# ------------------------------ fused kernel ---------------------------------
def ginnet_kernel(a_ref, x_ref, p_ref, w1s_ref, b1s_ref, w2s_ref, b2s_ref,
                  cw_ref, cb_ref, gf_ref, lp_ref, *, num_classes):
    a = a_ref[...]                            # [N, N]   bf16, A + I (eps=0 folded)
    x0 = x_ref[...].astype(jnp.float32)       # [N, 128] f32 carry between layers

    # 4 x { GINConv(MLP(Linear, ReLU, Linear)) ; F.relu ; dropout(eval)=identity }
    # bf16 operands into the MXU, f32 accumulation + f32 elementwise.
    def layer(l, x):
        xb = x.astype(jnp.bfloat16)
        agg = jnp.dot(a, xb, preferred_element_type=jnp.float32)       # (A+I) @ x
        h = jnp.dot(agg.astype(jnp.bfloat16), w1s_ref[l],
                    preferred_element_type=jnp.float32) + b1s_ref[l]
        h = jnp.maximum(h, 0.0)                                        # MLP ReLU
        h = jnp.dot(h.astype(jnp.bfloat16), w2s_ref[l],
                    preferred_element_type=jnp.float32) + b2s_ref[l]
        return jnp.maximum(h, 0.0)                                     # F.relu after conv

    x = jax.lax.fori_loop(0, NUM_LAYERS, layer, x0)

    # global_mean_pool(x, batch) == P @ x  (P: row-normalized assignment, f32)
    gf = jnp.dot(p_ref[...], x, preferred_element_type=jnp.float32)    # [GP, 128]
    gf_ref[...] = gf

    # Classifier: relu(lin1) -> dropout(identity, eval) -> log_softmax(lin2)
    h = jnp.dot(gf.astype(jnp.bfloat16), cw_ref[0],
                preferred_element_type=jnp.float32) + cb_ref[0]
    h = jnp.maximum(h, 0.0)
    logits = jnp.dot(h.astype(jnp.bfloat16), cw_ref[1],
                     preferred_element_type=jnp.float32) + cb_ref[1]

    # mask the zero-padded class lanes so log_softmax only sees real classes
    col = jax.lax.broadcasted_iota(jnp.int32, logits.shape, 1)
    logits = jnp.where(col < num_classes, logits, jnp.float32(-1e30))

    m = jnp.max(logits, axis=-1, keepdims=True)
    z = logits - m
    lse = jnp.log(jnp.sum(jnp.exp(z), axis=-1, keepdims=True))
    lp_ref[...] = z - lse                                               # log_softmax(dim=-1)


# ---------------------- one-time host-side preprocessing ----------------------
def prepare_params(params):
    """Pad to 128 lanes, stack the 4 layers / 2 classifier linears, cast weights to bf16."""
    w1s, b1s, w2s, b2s = [], [], [], []
    for (w1, b1, w2, b2) in params["convs"]:
        w1s.append(_pad2(w1, LANE, LANE))
        b1s.append(_pad2(b1, 1, LANE))
        w2s.append(_pad2(w2, LANE, LANE))
        b2s.append(_pad2(b2, 1, LANE))
    cw1, cb1, cw2, cb2 = params["classifier"]
    return {
        "w1s": jnp.stack(w1s).astype(jnp.bfloat16),        # [4, 128, 128]
        "b1s": jnp.stack(b1s).astype(jnp.float32),         # [4, 1, 128]
        "w2s": jnp.stack(w2s).astype(jnp.bfloat16),        # [4, 128, 128]
        "b2s": jnp.stack(b2s).astype(jnp.float32),         # [4, 1, 128]
        "cw": jnp.stack([_pad2(cw1, LANE, LANE),
                         _pad2(cw2, LANE, LANE)]).astype(jnp.bfloat16),  # [2, 128, 128]
        "cb": jnp.stack([_pad2(cb1, 1, LANE),
                         _pad2(cb2, 1, LANE)]).astype(jnp.float32),      # [2, 1, 128]
    }


def prepare_graph(edge_index, batch, num_nodes, num_graphs):
    """Dense A+I (bf16; counts are exact in bf16) + sublane-padded mean-pool matrix."""
    # TODO(synk): for realistic graphs (E << N^2, N >~ 1-2k) replace the dense A_hat
    # with an edge-list/CSR aggregation via PrefetchScalarGridSpec scalar prefetch and
    # grid-tile A with generation-aware VMEM budgets (v7x: 64 MiB phys / 2 TCs).
    a = jnp.zeros((num_nodes, num_nodes), jnp.float32)
    a = a.at[edge_index[1], edge_index[0]].add(1.0)
    a_hat_f32 = a + jnp.eye(num_nodes, dtype=jnp.float32)   # (1+eps)*x_i + sum_j x_j, eps=0
    gp = max(SUBLANE, ((num_graphs + SUBLANE - 1) // SUBLANE) * SUBLANE)
    one_hot = (batch[None, :] == jnp.arange(gp)[:, None]).astype(jnp.float32)
    p = one_hot / jnp.maximum(one_hot.sum(axis=1, keepdims=True), 1.0)  # [GP, N]
    return a_hat_f32.astype(jnp.bfloat16), p, a_hat_f32


# ------------------------------ forward wrapper --------------------------------
def ginnet_forward(prepped, x, a_hat, p, *, num_classes, nhid, num_graphs):
    """x: [N, F] node features; a_hat: [N, N] bf16 = A + I; p: [GP, N] pool matrix."""
    n = x.shape[0]
    gp = p.shape[0]
    xp = _pad2(x, n, LANE)            # only per-call padding

    inputs = [a_hat, xp, p, prepped["w1s"], prepped["b1s"], prepped["w2s"],
              prepped["b2s"], prepped["cw"], prepped["cb"]]

    # advisory cost estimate for the XLA scheduler
    flops = NUM_LAYERS * (2 * n * n * LANE + 2 * 2 * n * LANE * LANE) \
        + 2 * gp * n * LANE + 2 * 2 * gp * LANE * LANE
    bytes_accessed = sum(int(v.size) * v.dtype.itemsize for v in inputs) \
        + 2 * gp * LANE * 4
    cost = pl.CostEstimate(flops=flops, transcendentals=gp * (LANE + 1),
                           bytes_accessed=bytes_accessed)

    gf_pad, lp_pad = pl.pallas_call(
        partial(ginnet_kernel, num_classes=num_classes),
        out_shape=(jax.ShapeDtypeStruct((gp, LANE), jnp.float32),   # graph_feature (padded)
                   jax.ShapeDtypeStruct((gp, LANE), jnp.float32)),  # log-probs     (padded)
        in_specs=[_vmem_spec() for _ in inputs],
        out_specs=(_vmem_spec(), _vmem_spec()),
        compiler_params=pltpu.CompilerParams(vmem_limit_bytes=32 * 1024 * 1024),
        cost_estimate=cost,
    )(*inputs)

    graph_feature = gf_pad[:num_graphs, :nhid]
    logprobs = lp_pad[:num_graphs, :num_classes]
    return logprobs, graph_feature            # matches PyTorch (x, graph_feature)


# ------------------------------ pure-JAX reference ----------------------------
def reference_forward(params, x, a_hat_f32, p_f32):
    h = x
    for (w1, b1, w2, b2) in params["convs"]:
        agg = a_hat_f32 @ h
        h = jnp.maximum(agg @ w1 + b1, 0.0)            # MLP Linear->ReLU->Linear
        h = jnp.maximum(h @ w2 + b2, 0.0)              # outer F.relu
    gf = p_f32 @ h
    cw1, cb1, cw2, cb2 = params["classifier"]
    hh = jnp.maximum(gf @ cw1 + cb1, 0.0)
    logits = hh @ cw2 + cb2
    return jax.nn.log_softmax(logits, axis=-1), gf


# ------------------------------ parameter init --------------------------------
def init_linear(key, fan_in, fan_out):
    # PyTorch nn.Linear default init: U(-1/sqrt(fan_in), 1/sqrt(fan_in)) for W and b.
    k1, k2 = jax.random.split(key)
    bound = 1.0 / math.sqrt(fan_in)
    w = jax.random.uniform(k1, (fan_in, fan_out), jnp.float32, -bound, bound)
    b = jax.random.uniform(k2, (1, fan_out), jnp.float32, -bound, bound)
    return w, b


if __name__ == "__main__":
    # small shapes consistent with the module
    N, F, H, C, G, E = 16, 8, 32, 4, 2, 40   # nodes, num_features, nhid, num_classes, graphs, edges

    key = jax.random.PRNGKey(0)
    k_x, k_src, k_dst = jax.random.split(key, 3)
    x = jax.random.normal(k_x, (N, F), jnp.float32)
    src = jax.random.randint(k_src, (E,), 0, N)
    dst = jax.random.randint(k_dst, (E,), 0, N)
    edge_index = jnp.stack([src, dst])                          # [2, E], PyG convention
    batch = jnp.concatenate([jnp.zeros(N // 2, jnp.int32),
                             jnp.ones(N - N // 2, jnp.int32)])  # [N]

    # deterministic parameters (4 GINConv MLPs + classifier)
    pk = jax.random.PRNGKey(42)
    conv_params = []
    fan_in = F
    for _ in range(NUM_LAYERS):
        pk, k1, k2 = jax.random.split(pk, 3)
        w1, b1 = init_linear(k1, fan_in, H)
        w2, b2 = init_linear(k2, H, H)
        conv_params.append((w1, b1, w2, b2))
        fan_in = H
    pk, k1, k2 = jax.random.split(pk, 3)
    cw1, cb1 = init_linear(k1, H, H)
    cw2, cb2 = init_linear(k2, H, C)
    params = {"convs": conv_params, "classifier": (cw1, cb1, cw2, cb2)}

    # one-time preprocessing (hoisted out of the forward path)
    prepped = prepare_params(params)
    a_hat_bf16, p, a_hat_f32 = prepare_graph(edge_index, batch, N, G)

    logprobs, graph_feature = ginnet_forward(
        prepped, x, a_hat_bf16, p, num_classes=C, nhid=H, num_graphs=G)
    jax.block_until_ready((logprobs, graph_feature))

    assert logprobs.shape == (G, C) and graph_feature.shape == (G, H)
    # sanity: rows of log_softmax must exponentiate-sum to 1
    assert bool(jnp.all(jnp.abs(jnp.exp(logprobs).sum(-1) - 1.0) < 1e-4))
    # sanity: matches pure-f32 JAX reference (loose tolerance for bf16 MXU operands)
    ref_lp, ref_gf = reference_forward(params, x, a_hat_f32, p[:G])
    assert bool(jnp.allclose(graph_feature, ref_gf, atol=1e-1, rtol=1e-1))
    assert bool(jnp.allclose(logprobs, ref_lp, atol=1e-1, rtol=1e-1))
    print("KERNEL_OK")
</pallas_src>

<mosaic_0001>
module attributes {stable_mosaic.version = 11 : i64} {
  func.func @ginnet_kernel(%arg0: memref<16x16xbf16, #tpu.memory_space<vmem>>, %arg1: memref<16x128xf32, #tpu.memory_space<vmem>>, %arg2: memref<8x16xf32, #tpu.memory_space<vmem>>, %arg3: memref<4x128x128xbf16, #tpu.memory_space<vmem>>, %arg4: memref<4x1x128xf32, #tpu.memory_space<vmem>>, %arg5: memref<4x128x128xbf16, #tpu.memory_space<vmem>>, %arg6: memref<4x1x128xf32, #tpu.memory_space<vmem>>, %arg7: memref<2x128x128xbf16, #tpu.memory_space<vmem>>, %arg8: memref<2x1x128xf32, #tpu.memory_space<vmem>>, %arg9: memref<8x128xf32, #tpu.memory_space<vmem>>, %arg10: memref<8x128xf32, #tpu.memory_space<vmem>>) attributes {dimension_semantics = [], scalar_prefetch = 0 : i64, scratch_operands = 0 : i64, tpu.core_type = #tpu.core_type<tc>} {
    %c0 = arith.constant 0 : index
    %c0_0 = arith.constant 0 : index
    %0 = vector.load %arg0[%c0, %c0_0] : memref<16x16xbf16, #tpu.memory_space<vmem>>, vector<16x16xbf16>
    %c0_1 = arith.constant 0 : index
    %c0_2 = arith.constant 0 : index
    %1 = vector.load %arg1[%c0_1, %c0_2] : memref<16x128xf32, #tpu.memory_space<vmem>>, vector<16x128xf32>
    %c0_i32 = arith.constant 0 : i32
    %c4_i32 = arith.constant 4 : i32
    %2 = arith.addi %c0_i32, %c4_i32 : i32
    %c1_i32 = arith.constant 1 : i32
    %3 = scf.for %arg11 = %c0_i32 to %2 step %c1_i32 iter_args(%arg12 = %1) -> (vector<16x128xf32>)  : i32 {
      %41 = arith.truncf %arg12 : vector<16x128xf32> to vector<16x128xbf16>
      %cst_28 = arith.constant dense<0.000000e+00> : vector<16x128xf32>
      %42 = tpu.matmul %0, %41, %cst_28 {dimension_numbers = #tpu.dot_dimension_numbers<[1], [0], [0], [1], [0, 0, 1, 1], [], []>} : vector<16x16xbf16>, vector<16x128xbf16>, vector<16x128xf32> -> vector<16x128xf32>
      %43 = arith.truncf %42 : vector<16x128xf32> to vector<16x128xbf16>
      %44 = arith.index_cast %arg11 : i32 to index
      %c0_29 = arith.constant 0 : index
      %c0_30 = arith.constant 0 : index
      %45 = vector.load %arg3[%44, %c0_29, %c0_30] : memref<4x128x128xbf16, #tpu.memory_space<vmem>>, vector<1x128x128xbf16>
      %46 = vector.shape_cast %45 : vector<1x128x128xbf16> to vector<128x128xbf16>
      %cst_31 = arith.constant dense<0.000000e+00> : vector<16x128xf32>
      %47 = tpu.matmul %43, %46, %cst_31 {dimension_numbers = #tpu.dot_dimension_numbers<[1], [0], [0], [1], [0, 0, 1, 1], [], []>} : vector<16x128xbf16>, vector<128x128xbf16>, vector<16x128xf32> -> vector<16x128xf32>
      %48 = arith.index_cast %arg11 : i32 to index
      %c0_32 = arith.constant 0 : index
      %c0_33 = arith.constant 0 : index
      %49 = vector.load %arg4[%48, %c0_32, %c0_33] : memref<4x1x128xf32, #tpu.memory_space<vmem>>, vector<1x1x128xf32>
      %50 = vector.shape_cast %49 : vector<1x1x128xf32> to vector<1x128xf32>
      %51 = vector.broadcast %50 : vector<1x128xf32> to vector<16x128xf32>
      %52 = arith.addf %47, %51 : vector<16x128xf32>
      %cst_34 = arith.constant 0.000000e+00 : f32
      %53 = vector.broadcast %cst_34 : f32 to vector<16x128xf32>
      %54 = arith.maximumf %52, %53 : vector<16x128xf32>
      %55 = arith.truncf %54 : vector<16x128xf32> to vector<16x128xbf16>
      %56 = arith.index_cast %arg11 : i32 to index
      %c0_35 = arith.constant 0 : index
      %c0_36 = arith.constant 0 : index
      %57 = vector.load %arg5[%56, %c0_35, %c0_36] : memref<4x128x128xbf16, #tpu.memory_space<vmem>>, vector<1x128x128xbf16>
      %58 = vector.shape_cast %57 : vector<1x128x128xbf16> to vector<128x128xbf16>
      %cst_37 = arith.constant dense<0.000000e+00> : vector<16x128xf32>
      %59 = tpu.matmul %55, %58, %cst_37 {dimension_numbers = #tpu.dot_dimension_numbers<[1], [0], [0], [1], [0, 0, 1, 1], [], []>} : vector<16x128xbf16>, vector<128x128xbf16>, vector<16x128xf32> -> vector<16x128xf32>
      %60 = arith.index_cast %arg11 : i32 to index
      %c0_38 = arith.constant 0 : index
      %c0_39 = arith.constant 0 : index
      %61 = vector.load %arg6[%60, %c0_38, %c0_39] : memref<4x1x128xf32, #tpu.memory_space<vmem>>, vector<1x1x128xf32>
      %62 = vector.shape_cast %61 : vector<1x1x128xf32> to vector<1x128xf32>
      %63 = vector.broadcast %62 : vector<1x128xf32> to vector<16x128xf32>
      %64 = arith.addf %59, %63 : vector<16x128xf32>
      %cst_40 = arith.constant 0.000000e+00 : f32
      %65 = vector.broadcast %cst_40 : f32 to vector<16x128xf32>
      %66 = arith.maximumf %64, %65 : vector<16x128xf32>
      scf.yield %66 : vector<16x128xf32>
    }
    %c4_i32_3 = arith.constant 4 : i32
    %c0_4 = arith.constant 0 : index
    %c0_5 = arith.constant 0 : index
    %4 = vector.load %arg2[%c0_4, %c0_5] : memref<8x16xf32, #tpu.memory_space<vmem>>, vector<8x16xf32>
    %cst = arith.constant dense<0.000000e+00> : vector<8x128xf32>
    %5 = tpu.matmul %4, %3, %cst {dimension_numbers = #tpu.dot_dimension_numbers<[1], [0], [0], [1], [0, 0, 1, 1], [], []>} : vector<8x16xf32>, vector<16x128xf32>, vector<8x128xf32> -> vector<8x128xf32>
    %c0_6 = arith.constant 0 : index
    %c0_7 = arith.constant 0 : index
    %6 = vector.load %arg9[%c0_6, %c0_7] : memref<8x128xf32, #tpu.memory_space<vmem>>, vector<8x128xf32>
    tpu.vector_store %arg9[%c0_6, %c0_7], %5 {strides = array<i32>} : memref<8x128xf32, #tpu.memory_space<vmem>>, vector<8x128xf32>,
    %7 = arith.truncf %5 : vector<8x128xf32> to vector<8x128xbf16>
    %c0_8 = arith.constant 0 : index
    %c0_9 = arith.constant 0 : index
    %c0_10 = arith.constant 0 : index
    %8 = vector.load %arg7[%c0_8, %c0_9, %c0_10] : memref<2x128x128xbf16, #tpu.memory_space<vmem>>, vector<1x128x128xbf16>
    %9 = vector.shape_cast %8 : vector<1x128x128xbf16> to vector<128x128xbf16>
    %cst_11 = arith.constant dense<0.000000e+00> : vector<8x128xf32>
    %10 = tpu.matmul %7, %9, %cst_11 {dimension_numbers = #tpu.dot_dimension_numbers<[1], [0], [0], [1], [0, 0, 1, 1], [], []>} : vector<8x128xbf16>, vector<128x128xbf16>, vector<8x128xf32> -> vector<8x128xf32>
    %c0_12 = arith.constant 0 : index
    %c0_13 = arith.constant 0 : index
    %c0_14 = arith.constant 0 : index
    %11 = vector.load %arg8[%c0_12, %c0_13, %c0_14] : memref<2x1x128xf32, #tpu.memory_space<vmem>>, vector<1x1x128xf32>
    %12 = vector.shape_cast %11 : vector<1x1x128xf32> to vector<1x128xf32>
    %13 = vector.broadcast %12 : vector<1x128xf32> to vector<8x128xf32>
    %14 = arith.addf %10, %13 : vector<8x128xf32>
    %cst_15 = arith.constant 0.000000e+00 : f32
    %15 = vector.broadcast %cst_15 : f32 to vector<8x128xf32>
    %16 = arith.maximumf %14, %15 : vector<8x128xf32>
    %17 = arith.truncf %16 : vector<8x128xf32> to vector<8x128xbf16>
    %c1 = arith.constant 1 : index
    %c0_16 = arith.constant 0 : index
    %c0_17 = arith.constant 0 : index
    %18 = vector.load %arg7[%c1, %c0_16, %c0_17] : memref<2x128x128xbf16, #tpu.memory_space<vmem>>, vector<1x128x128xbf16>
    %19 = vector.shape_cast %18 : vector<1x128x128xbf16> to vector<128x128xbf16>
    %cst_18 = arith.constant dense<0.000000e+00> : vector<8x128xf32>
    %20 = tpu.matmul %17, %19, %cst_18 {dimension_numbers = #tpu.dot_dimension_numbers<[1], [0], [0], [1], [0, 0, 1, 1], [], []>} : vector<8x128xbf16>, vector<128x128xbf16>, vector<8x128xf32> -> vector<8x128xf32>
    %c1_19 = arith.constant 1 : index
    %c0_20 = arith.constant 0 : index
    %c0_21 = arith.constant 0 : index
    %21 = vector.load %arg8[%c1_19, %c0_20, %c0_21] : memref<2x1x128xf32, #tpu.memory_space<vmem>>, vector<1x1x128xf32>
    %22 = vector.shape_cast %21 : vector<1x1x128xf32> to vector<1x128xf32>
    %23 = vector.broadcast %22 : vector<1x128xf32> to vector<8x128xf32>
    %24 = arith.addf %20, %23 : vector<8x128xf32>
    %25 = tpu.iota {dimensions = array<i32: 1>} : vector<8x128xi32>
    %c4_i32_22 = arith.constant 4 : i32
    %26 = vector.broadcast %c4_i32_22 : i32 to vector<8x128xi32>
    %27 = arith.cmpi slt, %25, %26 : vector<8x128xi32>
    %cst_23 = arith.constant -1.000000e+30 : f32
    %28 = vector.broadcast %cst_23 : f32 to vector<8x128xf32>
    %29 = arith.select %27, %24, %28 : vector<8x128xi1>, vector<8x128xf32>
    %cst_24 = arith.constant dense<0xFF800000> : vector<8xf32>
    %30 = vector.multi_reduction <maximumf>, %29, %cst_24 [1] : vector<8x128xf32> to vector<8xf32>
    %31 = vector.shape_cast %30 : vector<8xf32> to vector<8x1xf32>
    %32 = vector.broadcast %31 : vector<8x1xf32> to vector<8x128xf32>
    %33 = arith.subf %29, %32 : vector<8x128xf32>
    %34 = math.exp %33 : vector<8x128xf32>
    %cst_25 = arith.constant dense<0.000000e+00> : vector<8xf32>
    %35 = vector.multi_reduction <add>, %34, %cst_25 [1] : vector<8x128xf32> to vector<8xf32>
    %36 = vector.shape_cast %35 : vector<8xf32> to vector<8x1xf32>
    %37 = math.log %36 : vector<8x1xf32>
    %38 = vector.broadcast %37 : vector<8x1xf32> to vector<8x128xf32>
    %39 = arith.subf %33, %38 : vector<8x128xf32>
    %c0_26 = arith.constant 0 : index
    %c0_27 = arith.constant 0 : index
    %40 = vector.load %arg10[%c0_26, %c0_27] : memref<8x128xf32, #tpu.memory_space<vmem>>, vector<8x128xf32>
    tpu.vector_store %arg10[%c0_26, %c0_27], %39 {strides = array<i32>} : memref<8x128xf32, #tpu.memory_space<vmem>>, vector<8x128xf32>,
    return
  }
}

</mosaic_0001>

<bundles_post_ra>
// kernel: tpu_custom_call.1
= control target key start
LH: loop header
LB: loop body
LE: loop exit
PB: predicated region body
PF: predicated region fallthrough
CT: control target
= control target key end

     0   :  { %16 = vsyncpa [#allocation3], 0  ;;  %s1509_s0 = inlined_call_operand.hbm [shape: bf16[16,16], index: 0, kind: input, shape index: {}]   ;;  %s1510_s1 = inlined_call_operand.hbm [shape: f32[16,128], index: 1, kind: input, shape index: {}]   ;;  %s1511_s2 = inlined_call_operand.hbm [shape: f32[8,16], index: 2, kind: input, shape index: {}]   ;;  %s1512_s3 = inlined_call_operand.hbm [shape: bf16[4,128,128], index: 3, kind: input, shape index: {}]   ;;  %s1513_s4 = inlined_call_operand.vmem [shape: f32[4,1,128], index: 4, kind: input, shape index: {}]   ;;  %s1514_s5 = inlined_call_operand.hbm [shape: bf16[4,128,128], index: 5, kind: input, shape index: {}]   ;;  %s1515_s6 = inlined_call_operand.vmem [shape: f32[4,1,128], index: 6, kind: input, shape index: {}]   ;;  %s1516_s7 = inlined_call_operand.hbm [shape: bf16[2,128,128], index: 7, kind: input, shape index: {}]   ;;  %s1517_s8 = inlined_call_operand.vmem [shape: f32[2,1,128], index: 8, kind: input, shape index: {}]   ;;  %s1518_s9 = inlined_call_operand.hbm [shape: f32[8,128], index: 9, kind: output, shape index: {0}]   ;;  %s1519_s10 = inlined_call_operand.hbm [shape: f32[8,128], index: 10, kind: output, shape index: {1}]  }
   0x1   :  { %17 = vsyncpa [#allocation6], 0 }
   0x2   :  { %18 = vsyncpa [#allocation9], 0 }
   0x3   :  { %19 = vsyncpa [#allocation12], 0 }
   0x4   :  { %20 = vsyncpa [#allocation4], 0 }
   0x5   :  { %21 = vsyncpa [#allocation15], 0  ;;  %s1255_s13 = smov [#allocation5]   ;;  %s1043_s17 = scalar_lea.hbm %s1510_s1, 256 }
   0x6   :  { %s39_s14 = sshll.u32 %s1255_s13, 4  ;;  %p1044_p0 = scmp.ne.s32.totalorder %s1510_s1, %s1043_s17  ;;  %s40_s14 = int_to_ptr.vmem [resolvable:$true] %s39_s14 }
   0x7   :  { %p1047_p1 = scmp.lt.u32.totalorder %s1043_s17, %s1510_s1 }
   0x9   :  { %p1049_p2 = pnand %p1047_p1, %p1044_p0 }
   0xb   :  { %1052 = shalt.err (!%p1049_p2)
}
   0xc   :  { %s1053_s22 = scalar_lea.vmem %s40_s14, 256  ;;  %p1058_p4 = scmp.lt.s32.totalorder %s40_s14, %s40_s14 }
   0xd   :  { %p1054_p3 = scmp.ne.s32.totalorder %s40_s14, %s1053_s22  ;;  %p1059_p5 = scmp.lt.s32.totalorder %s1053_s22, %s1053_s22 }
   0xf   :  { %p1060_p6 = por %p1059_p5, %p1058_p4 }
  0x11   :  { %p1061_p7 = pnand %p1060_p6, %p1054_p3 }
  0x13   :  { %1064 = shalt.err (!%p1061_p7)
}
  0x14   :  { %s1256_s23 = smov 128   ;;  %s1257_s24 = smov 8  }
  0x15   :  { %45 = dma.hbm_to_vmem [thread:$0]  %s1510_s1, 256, %s40_s14, [#allocation6], %s1256_s23, %s1256_s23, %s1257_s24  }
  0x16   :  { %s1258_s27 = smov [#allocation8]   ;;  %s1259_s29 = smov [#allocation2]  }
  0x17   :  { %s61_s28 = sshll.u32 %s1258_s27, 4  ;;  %s27_s30 = sshll.u32 %s1259_s29, 4  ;;  %s62_s28 = int_to_ptr.vmem [resolvable:$true] %s61_s28  ;;  %s28_s30 = int_to_ptr.vmem [resolvable:$true] %s27_s30 }
  0x18   :  { %s1065_s13 = scalar_lea.hbm %s1512_s3, 4096 }
  0x19   :  { %p1066_p8 = scmp.ne.s32.totalorder %s1512_s3, %s1065_s13  ;;  %p1069_p9 = scmp.lt.u32.totalorder %s1065_s13, %s1512_s3 }
  0x1b   :  { %p1071_p10 = pnand %p1069_p9, %p1066_p8 }
  0x1d   :  { %1074 = shalt.err (!%p1071_p10)
}
  0x1e   :  { %s1075_s1 = scalar_lea.vmem %s62_s28, 4096  ;;  %p1080_p12 = scmp.lt.s32.totalorder %s62_s28, %s62_s28 }
  0x1f   :  { %p1076_p11 = scmp.ne.s32.totalorder %s62_s28, %s1075_s1  ;;  %p1081_p13 = scmp.lt.s32.totalorder %s1075_s1, %s1075_s1 }
  0x21   :  { %p1082_p0 = por %p1081_p13, %p1080_p12 }
  0x23   :  { %p1083_p1 = pnand %p1082_p0, %p1076_p11 }
  0x25   :  { %1086 = shalt.err (!%p1083_p1)
}
  0x26   :  { %s1260_s14 = smov 64   ;;  %s1261_s19 = smov 4  }
  0x27   :  { %67 = dma.hbm_to_vmem [thread:$0]  %s1512_s3, 4096, %s62_s28, [#allocation9], %s1260_s14, %s1260_s14, %s1261_s19  }
  0x28   :  { %s1087_s24 = scalar_lea.hbm %s1509_s0, 128 }
  0x29   :  { %p1088_p2 = scmp.ne.s32.totalorder %s1509_s0, %s1087_s24  ;;  %p1091_p3 = scmp.lt.u32.totalorder %s1087_s24, %s1509_s0 }
  0x2b   :  { %p1093_p4 = pnand %p1091_p3, %p1088_p2 }
  0x2d   :  { %1096 = shalt.err (!%p1093_p4)
}
  0x2e   :  { %s1097_s11 = scalar_lea.vmem %s28_s30, 128  ;;  %p1102_p6 = scmp.lt.s32.totalorder %s28_s30, %s28_s30 }
  0x2f   :  { %p1098_p5 = scmp.ne.s32.totalorder %s28_s30, %s1097_s11  ;;  %p1103_p7 = scmp.lt.s32.totalorder %s1097_s11, %s1097_s11 }
  0x31   :  { %p1104_p8 = por %p1103_p7, %p1102_p6 }
  0x33   :  { %p1105_p9 = pnand %p1104_p8, %p1098_p5 }
  0x35   :  { %1108 = shalt.err (!%p1105_p9)
}
  0x36   :  { %33 = dma.hbm_to_vmem [thread:$0]  %s1509_s0, 128, %s28_s30, [#allocation3], %s1260_s14, %s1260_s14, %s1261_s19  }
  0x37   :  { %s1262_s12 = smov [#allocation7]   ;;  %s1263_s15 = smov [#allocation10]  }
  0x38   :  { %s52_s13 = sshll.u32 %s1262_s12, 4  ;;  %s75_s16 = sshll.u32 %s1263_s15, 4  ;;  %s53_s13 = int_to_ptr.vmem [resolvable:$true] %s52_s13  ;;  %s76_s16 = int_to_ptr.vmem [resolvable:$true] %s75_s16 }
  0x39   :  { %s1109_s1 = scalar_lea.hbm %s1511_s2, 128 }
  0x3a   :  { %p1110_p10 = scmp.ne.s32.totalorder %s1511_s2, %s1109_s1  ;;  %p1113_p11 = scmp.lt.u32.totalorder %s1109_s1, %s1511_s2 }
  0x3c   :  { %p1115_p12 = pnand %p1113_p11, %p1110_p10 }
  0x3e   :  { %1118 = shalt.err (!%p1115_p12)
}
  0x3f   :  { %s1119_s0 = scalar_lea.vmem %s53_s13, 128  ;;  %p1124_p0 = scmp.lt.s32.totalorder %s53_s13, %s53_s13 }
  0x40   :  { %p1120_p13 = scmp.ne.s32.totalorder %s53_s13, %s1119_s0  ;;  %p1125_p1 = scmp.lt.s32.totalorder %s1119_s0, %s1119_s0 }
  0x42   :  { %p1126_p2 = por %p1125_p1, %p1124_p0 }
  0x44   :  { %p1127_p3 = pnand %p1126_p2, %p1120_p13 }
  0x46   :  { %1130 = shalt.err (!%p1127_p3)
}
  0x47   :  { %55 = dma.hbm_to_vmem [thread:$0]  %s1511_s2, 128, %s53_s13, [#allocation6]  }
  0x48   :  { %s1131_s27 = scalar_lea.hbm %s1514_s5, 4096 }
  0x49   :  { %p1132_p4 = scmp.ne.s32.totalorder %s1514_s5, %s1131_s27  ;;  %p1135_p5 = scmp.lt.u32.totalorder %s1131_s27, %s1514_s5 }
  0x4b   :  { %p1137_p6 = pnand %p1135_p5, %p1132_p4 }
  0x4d   :  { %1140 = shalt.err (!%p1137_p6)
}
  0x4e   :  { %s1141_s12 = scalar_lea.vmem %s76_s16, 4096  ;;  %p1146_p8 = scmp.lt.s32.totalorder %s76_s16, %s76_s16 }
  0x4f   :  { %p1142_p7 = scmp.ne.s32.totalorder %s76_s16, %s1141_s12  ;;  %p1147_p9 = scmp.lt.s32.totalorder %s1141_s12, %s1141_s12 }
  0x51   :  { %p1148_p10 = por %p1147_p9, %p1146_p8 }
  0x53   :  { %p1149_p11 = pnand %p1148_p10, %p1142_p7 }
  0x55   :  { %1152 = shalt.err (!%p1149_p11)
}
  0x56   :  { %81 = dma.hbm_to_vmem [thread:$0]  %s1514_s5, 4096, %s76_s16, [#allocation9], %s1260_s14, %s1260_s14, %s1261_s19  }
  0x57   :  { %s1264_s15 = smov [#allocation11]   ;;  %s1153_s20 = scalar_lea.hbm %s1516_s7, 2048 }
  0x58   :  { %s89_s17 = sshll.u32 %s1264_s15, 4  ;;  %p1154_p12 = scmp.ne.s32.totalorder %s1516_s7, %s1153_s20  ;;  %s90_s17 = int_to_ptr.vmem [resolvable:$true] %s89_s17 }
  0x59   :  { %p1157_p13 = scmp.lt.u32.totalorder %s1153_s20, %s1516_s7 }
  0x5b   :  { %p1159_p0 = pnand %p1157_p13, %p1154_p12 }
  0x5d   :  { %1162 = shalt.err (!%p1159_p0)
}
  0x5e   :  { %s1163_s30 = scalar_lea.vmem %s90_s17, 2048  ;;  %p1168_p2 = scmp.lt.s32.totalorder %s90_s17, %s90_s17 }
  0x5f   :  { %p1164_p1 = scmp.ne.s32.totalorder %s90_s17, %s1163_s30  ;;  %p1169_p3 = scmp.lt.s32.totalorder %s1163_s30, %s1163_s30 }
  0x61   :  { %p1170_p4 = por %p1169_p3, %p1168_p2 }
  0x63   :  { %p1171_p5 = pnand %p1170_p4, %p1164_p1 }
  0x65   :  { %1174 = shalt.err (!%p1171_p5)
}
  0x66   :  { %95 = dma.hbm_to_vmem [thread:$0]  %s1516_s7, 2048, %s90_s17, [#allocation12], %s1260_s14, %s1260_s14, %s1261_s19  }
  0x67   :  { %1231 = dma.done.wait [#allocation3], 128  }
  0x68   :  { %1232 = vsyncadd [#allocation3], 4294967168 }
  0x69   :  { %1233 = dma.done.wait [#allocation6], 384  }
  0x6a   :  { %1234 = vsyncadd [#allocation6], 4294966912 }
  0x6b   :  { %1235 = dma.done.wait [#allocation9], 8192  }
  0x6c   :  { %1236 = vsyncadd [#allocation9], 4294959104 }
  0x6d   :  { %1237 = dma.done.wait [#allocation12], 2048  }
  0x6e   :  { %1238 = vsyncadd [#allocation12], 4294965248  ;;  %v1411_v0 = vld [vmem:[#allocation2] sm:$0xf]  ;;  %v1413_v1 = vld [vmem:[#allocation2 + $0x4] sm:$0xf] }
  0x6f   :  { %v119_v2 = vld [vmem:[#allocation5] sm:$0xff]   ;;  %v120_v3 = vld [vmem:[#allocation5 + $0x8] sm:$0xff]   ;;  %s1419_s24 = smov 0  }
  0x70 LB: > { %v1265_v4 = vmov 0.0   ;;  %vm1266_vm0 = vmmov 0   ;;  %v129_v5 = vpack.c.bf16 %v1245_v3, %v1249_v2  ;;  %s827_s7 = sshll.u32 %s1253_s24, 6  ;;  %v784_v6 = vcombine.low %v1411_v0, %v1413_v1  ;;  %s200_s27 = scalar_lea.vmem %s1513_s4, %s1253_s24  ;;  %s1253_s24 = sphi %s1419_s24, %s126_s24   ;;  %v1249_v2 = vphi %v119_v2, %v1521_v2   ;;  %v1245_v3 = vphi %v120_v3, %v1520_v3  }
  0x71   : > { %870 = vmatprep.subr.bf16.mxu0 %v1265_v4  ;;  %872 = vmatprep.mubr.msk.bf16.mxu0 %vm1266_vm0, %v1265_v4  ;;  %vm135_vm1 = vcmask 130048   ;;  %s183_s14 = scalar_lea.vmem [#allocation8], %s827_s7  ;;  %s1441_s19 = scalar_lea.vmem [#allocation10], %s827_s7  ;;  %v788_v28 = vld [vmem:[%s200_s27] ss:$0 sm:$0xff] }
  0x72   : > { %876 = vmatprep.subr.bf16.mxu1 %v1265_v4  ;;  %892 = vmatprep.mubr.msk.bf16.mxu1 %vm1266_vm0, %v1265_v4  ;;  %v1007_v7 = vld [vmem:[%s183_s14] sm:$0xff]   ;;  %v1008_v8 = vld [vmem:[%s183_s14 + $0x8] sm:$0xff]   ;;  %v1009_v9 = vld [vmem:[%s183_s14 + $0x10] sm:$0xff]   ;;  %s318_s3 = scalar_lea.vmem %s1515_s6, %s1253_s24  ;;  %s126_s24 = sadd.s32 1, %s1253_s24  }
  0x73   : > { %871 = vmatpush3.bf16.msra.mxu0 %v129_v5  ;;  %877 = vmatpush3.bf16.msra.mxu1 %v1007_v7  ;;  %v1010_v10 = vld [vmem:[%s183_s14 + $0x18] sm:$0xff]   ;;  %v1011_v11 = vld [vmem:[%s183_s14 + $0x20] sm:$0xff]   ;;  %v1012_v12 = vld [vmem:[%s183_s14 + $0x28] sm:$0xff]   ;;  %p123_p6 = scmp.ge.s32.totalorder %s126_s24, 4  }
  0x74   : > { %896 = vmatprep.subr.bf16.mxu0 %v1265_v4  ;;  %878 = vmatprep.subr.bf16.mxu1 %v1265_v4  ;;  %v1013_v13 = vld [vmem:[%s183_s14 + $0x30] sm:$0xff]   ;;  %v1014_v14 = vld [vmem:[%s183_s14 + $0x38] sm:$0xff]   ;;  %v1015_v15 = vld [vmem:[%s1441_s19] sm:$0xff]   ;;  %v1267_v48 = vmov (%p123_p6), 0.0|0.0   ;;  %vm1268_vm2 = vmmov (%p123_p6), 0   ;;  %v1269_v49 = vmov (%p123_p6), 0.0  }
  0x75   : > { %v1016_v16 = vld [vmem:[%s1441_s19 + $0x8] sm:$0xff]   ;;  %v1017_v17 = vld [vmem:[%s1441_s19 + $0x10] sm:$0xff]   ;;  %v1018_v18 = vld [vmem:[%s1441_s19 + $0x18] sm:$0xff]   ;;  %s1270_s2 = smov (%p123_p6), [#allocation13]  }
  0x76   : > { %873 = vmatmul.mubr.msk.bf16.vlgmr.msra.gmra.mrb[0].mxu0 %vm135_vm1, %v784_v6  ;;  %v1019_v19 = vld [vmem:[%s1441_s19 + $0x20] sm:$0xff]   ;;  %v1020_v20 = vld [vmem:[%s1441_s19 + $0x28] sm:$0xff]   ;;  %v1021_v26 = vld [vmem:[%s1441_s19 + $0x30] sm:$0xff]   ;;  %s741_s13 = sshll.u32 (%p123_p6), %s1270_s2, 4  ;;  %s742_s13 = int_to_ptr.vmem [resolvable:$true] %s741_s13 }
  0x77   : > { %912 = vmatprep.mubr.msk.bf16.mxu0 %vm1266_vm0, %v1265_v4  ;;  %879 = vmatpush3.bf16.msra.mxu1 %v1008_v8  ;;  %v1022_v27 = vld [vmem:[%s1441_s19 + $0x38] sm:$0xff]   ;;  %v798_v38 = vld [vmem:[%s318_s3] ss:$0 sm:$0xff]  ;;  %v1024_v52 = vld [vmem:[#allocation11 + $0x8] sm:$0xff] (%p123_p6)   ;;  %s1175_s15 = scalar_lea.vmem (%p123_p6), %s742_s13, 128  ;;  %p1180_p8 = scmp.lt.s32.totalorder (%p123_p6), %s742_s13, %s742_s13 }
  0x78   : > { %880 = vmatprep.subr.bf16.mxu1 %v1265_v4  ;;  %897 = vmatpush3.bf16.msra.mxu0 %v1015_v15  ;;  %v1023_v50 = vld [vmem:[#allocation11] sm:$0xff] (%p123_p6)   ;;  %v417_v51 = vld [vmem:[#allocation7] sm:$0xff] (%p123_p6)  ;;  %v1025_v53 = vld [vmem:[#allocation11 + $0x10] sm:$0xff] (%p123_p6)   ;;  %p1176_p7 = scmp.ne.s32.totalorder (%p123_p6), %s742_s13, %s1175_s15  ;;  %p1181_p9 = scmp.lt.s32.totalorder (%p123_p6), %s1175_s15, %s1175_s15 }
  0x79   : > { %898 = vmatprep.subr.bf16.mxu0 %v1265_v4  ;;  %v1026_v54 = vld [vmem:[#allocation11 + $0x18] sm:$0xff] (%p123_p6)   ;;  %v1027_v55 = vld [vmem:[#allocation11 + $0x20] sm:$0xff] (%p123_p6)   ;;  %v1028_v56 = vld [vmem:[#allocation11 + $0x28] sm:$0xff] (%p123_p6)  }
  0x7a   :  { %v1029_v57 = vld [vmem:[#allocation11 + $0x30] sm:$0xff] (%p123_p6)   ;;  %v1030_v58 = vld [vmem:[#allocation11 + $0x38] sm:$0xff] (%p123_p6)   ;;  %v1031_v59 = vld [vmem:[#allocation11 + $0x40] sm:$0xff] (%p123_p6)   ;;  %p1182_p10 = por (%p123_p6), %p1181_p9, %p1180_p8 }
  0x7b   : > { %881 = vmatpush3.bf16.msra.mxu1 %v1009_v9  ;;  %v1032_v60 = vld [vmem:[#allocation11 + $0x48] sm:$0xff] (%p123_p6)   ;;  %v1033_v61 = vld [vmem:[#allocation11 + $0x50] sm:$0xff] (%p123_p6)   ;;  %v1034_v62 = vld [vmem:[#allocation11 + $0x58] sm:$0xff] (%p123_p6)  }
  0x7c   : > { %882 = vmatprep.subr.bf16.mxu1 %v1265_v4  ;;  %899 = vmatpush3.bf16.msra.mxu0 %v1016_v16  ;;  %v1035_v63 = vld [vmem:[#allocation11 + $0x60] sm:$0xff] (%p123_p6)   ;;  %v1036_v0 = vld [vmem:[#allocation11 + $0x68] sm:$0xff] (%p123_p6)   ;;  %v1038_v5 = vld [vmem:[#allocation11 + $0x78] sm:$0xff] (%p123_p6)   ;;  %p1183_p11 = pnand (%p123_p6), %p1182_p10, %p1176_p7 }
  0x7d   : > { %900 = vmatprep.subr.bf16.mxu0 %v1265_v4  ;;  %v808_v6 = vld [vmem:[%s1517_s8] ss:$0 sm:$0xff] (%p123_p6)  ;;  %v818_v16 = vld [vmem:[%s1517_s8 + $0x1] ss:$0 sm:$0xff] (%p123_p6) }
  0x7f   : > { %883 = vmatpush3.bf16.msra.mxu1 %v1010_v10 }
  0x80   : > { %884 = vmatprep.subr.bf16.mxu1 %v1265_v4  ;;  %901 = vmatpush3.bf16.msra.mxu0 %v1017_v17 }
  0x81   : > { %902 = vmatprep.subr.bf16.mxu0 %v1265_v4 }
  0x83   : > { %885 = vmatpush3.bf16.msra.mxu1 %v1011_v11 }
  0x84   : > { %886 = vmatprep.subr.bf16.mxu1 %v1265_v4  ;;  %903 = vmatpush3.bf16.msra.mxu0 %v1018_v18 }
  0x85   : > { %904 = vmatprep.subr.bf16.mxu0 %v1265_v4 }
  0x87   : > { %887 = vmatpush3.bf16.msra.mxu1 %v1012_v12 }
  0x88   : > { %888 = vmatprep.subr.bf16.mxu1 %v1265_v4  ;;  %905 = vmatpush3.bf16.msra.mxu0 %v1019_v19 }
  0x89   : > { %906 = vmatprep.subr.bf16.mxu0 %v1265_v4 }
  0x8b   : > { %889 = vmatpush3.bf16.msra.mxu1 %v1013_v13 }
  0x8c   : > { %890 = vmatprep.subr.bf16.mxu1 %v1265_v4  ;;  %907 = vmatpush3.bf16.msra.mxu0 %v1020_v20 }
  0x8d   : > { %908 = vmatprep.subr.bf16.mxu0 %v1265_v4 }
  0x8f   : > { %891 = vmatpush3.bf16.msra.mxu1 %v1014_v14  ;;  %v720_v14 = vlaneseq (%p123_p6) }
  0x90   : > { %909 = vmatpush3.bf16.msra.mxu0 %v1021_v26  ;;  %923 = vmatprep.subr.bf16.mxu1 (%p123_p6), %v1269_v49 }
  0x91   : > { %910 = vmatprep.subr.bf16.mxu0 %v1265_v4  ;;  %v1037_v4 = vld [vmem:[#allocation11 + $0x70] sm:$0xff] (%p123_p6)   ;;  %v721_v15 = vand.u32 (%p123_p6), 127, %v720_v14 }
  0x93   :  { %vm722_vm3 = vcmp.lt.s32.totalorder (%p123_p6), %v721_v15, 4 }
  0x94   : > { %911 = vmatpush3.bf16.msra.mxu0 %v1022_v27 }
  0x95   :  { %963 = vmatprep.subr.bf16.mxu0 (%p123_p6), %v1267_v48 }
 0x149   : > { %v173_v21 = vpop.f32.mrb[0].mxu0 }
 0x14a   : > { %v874_v22 = vpop.f32.mrb[1].mxu0 }
 0x14b   : > { %v176_v23 = vpop.f32.mrb[2].mxu0 }
 0x14c   : > { %v180_v24 = vpack.c.bf16 %v176_v23, %v173_v21  ;;  %v875_v25 = vpop.f32.mrb[3].mxu0 }
 0x14e   : > { %893 = vmatmul.mubr.bf16.vlgmr.msra.gmra.mrb[0].mxu1 %v180_v24 }
 0x14f   :  { %924 = vmatpush3.bf16.msra.mxu1 (%p123_p6), %v1023_v50  ;;  %939 = vmatprep.mubr.msk.bf16.mxu1 (%p123_p6), %vm1268_vm2, %v1269_v49 }
 0x150   :  { %925 = vmatprep.subr.bf16.mxu1 (%p123_p6), %v1269_v49 }
 0x153   :  { %926 = vmatpush3.bf16.msra.mxu1 (%p123_p6), %v1024_v52 }
 0x154   :  { %927 = vmatprep.subr.bf16.mxu1 (%p123_p6), %v1269_v49 }
 0x157   :  { %928 = vmatpush3.bf16.msra.mxu1 (%p123_p6), %v1025_v53 }
 0x158   :  { %929 = vmatprep.subr.bf16.mxu1 (%p123_p6), %v1269_v49 }
 0x15b   :  { %930 = vmatpush3.bf16.msra.mxu1 (%p123_p6), %v1026_v54 }
 0x15c   :  { %931 = vmatprep.subr.bf16.mxu1 (%p123_p6), %v1269_v49 }
 0x15f   :  { %932 = vmatpush3.bf16.msra.mxu1 (%p123_p6), %v1027_v55 }
 0x160   :  { %933 = vmatprep.subr.bf16.mxu1 (%p123_p6), %v1269_v49 }
 0x163   :  { %934 = vmatpush3.bf16.msra.mxu1 (%p123_p6), %v1028_v56 }
 0x164   :  { %935 = vmatprep.subr.bf16.mxu1 (%p123_p6), %v1269_v49 }
 0x167   :  { %936 = vmatpush3.bf16.msra.mxu1 (%p123_p6), %v1029_v57 }
 0x168   :  { %937 = vmatprep.subr.bf16.mxu1 (%p123_p6), %v1269_v49 }
 0x16b   :  { %938 = vmatpush3.bf16.msra.mxu1 (%p123_p6), %v1030_v58 }
 0x221   : > { %v290_v29 = vpop.f32.mrb[0].mxu1 }
 0x222   : > { %v291_v30 = vadd.f32 %v788_v28, %v290_v29  ;;  %v894_v31 = vpop.f32.mrb[1].mxu1 }
 0x223   : > { %v293_v32 = vpop.f32.mrb[2].mxu1 }
 0x224   : > { %v294_v33 = vadd.f32 %v788_v28, %v293_v32  ;;  %v895_v34 = vpop.f32.mrb[3].mxu1  ;;  %v297_v35 = vmax.f32 %v291_v30, 0.0 }
 0x226   : > { %v298_v36 = vmax.f32 %v294_v33, 0.0 }
 0x228   : > { %v299_v37 = vpack.c.bf16 %v298_v36, %v297_v35 }
 0x22a   : > { %913 = vmatmul.mubr.bf16.vlgmr.msra.gmra.mrb[4].mxu0 %v299_v37 }
 0x22b   :  { %920 = vmatprep.mubr.msk.f32.mxu0 (%p123_p6), %vm1268_vm2, %v1269_v49 }
 0x2fd   : > { %v408_v39 = vpop.f32.mrb[4].mxu0 }
 0x2fe   : > { %v409_v40 = vadd.f32 %v798_v38, %v408_v39  ;;  %v914_v41 = vpop.f32.mrb[5].mxu0  ;;  %125 = sbr.rel (!%p123_p6) target bundleno = 112 (0x70), region = 101 }
 0x2ff   : > { %v411_v42 = vpop.f32.mrb[6].mxu0 }
 0x300   : > { %v415_v43 = vmax.f32 %v409_v40, 0.0   ;;  %v412_v44 = vadd.f32 %v798_v38, %v411_v42  ;;  %v915_v45 = vpop.f32.mrb[7].mxu0 }
 0x302   : > { %v416_v46 = vmax.f32 %v412_v44, 0.0   ;;  %v1521_v2 = vmov %v415_v43 }
 0x304   : > { %v1520_v3 = vmov %v416_v46  ;;  %v964_v47 = vpack.c.bf16 (%p123_p6), %v416_v46, %v415_v43 }
 0x306   :  { %965 = vmatpush3.bf16.msra.mxu0 %v964_v47 }
 0x307   :  { %943 = vmatprep.subr.bf16.mxu0 %v1269_v49 }
 0x309   :  { %921 = vmatmul.mubr.msk.f32.vlgmr.msra.gmra.mrb[0].mxu0 %vm135_vm1, %v417_v51 }
 0x30a   :  { %959 = vmatprep.mubr.msk.bf16.mxu0 %vm1268_vm2, %v1269_v49  ;;  %944 = vmatpush3.bf16.msra.mxu0 %v1031_v59 }
 0x30b   :  { %945 = vmatprep.subr.bf16.mxu0 %v1269_v49 }
 0x30e   :  { %946 = vmatpush3.bf16.msra.mxu0 %v1032_v60 }
 0x30f   :  { %947 = vmatprep.subr.bf16.mxu0 %v1269_v49 }
 0x312   :  { %948 = vmatpush3.bf16.msra.mxu0 %v1033_v61 }
 0x313   :  { %949 = vmatprep.subr.bf16.mxu0 %v1269_v49 }
 0x316   :  { %950 = vmatpush3.bf16.msra.mxu0 %v1034_v62 }
 0x317   :  { %951 = vmatprep.subr.bf16.mxu0 %v1269_v49 }
 0x31a   :  { %952 = vmatpush3.bf16.msra.mxu0 %v1035_v63 }
 0x31b   :  { %953 = vmatprep.subr.bf16.mxu0 %v1269_v49 }
 0x31e   :  { %954 = vmatpush3.bf16.msra.mxu0 %v1036_v0 }
 0x31f   :  { %955 = vmatprep.subr.bf16.mxu0 %v1269_v49 }
 0x322   :  { %956 = vmatpush3.bf16.msra.mxu0 %v1037_v4 }
 0x323   :  { %957 = vmatprep.subr.bf16.mxu0 %v1269_v49 }
 0x326   :  { %958 = vmatpush3.bf16.msra.mxu0 %v1038_v5 }
 0x3dc   :  { %v488_v1 = vpop.f32.mrb[0].mxu0 }
 0x3dd   :  { %v493_v2 = vpack.c.bf16 %v488_v1, %v488_v1  ;;  %492 = vst [vmem:[#allocation13] sm:$0xff] %v488_v1  ;;  %v922_v3 = vpop.f32.mrb[1].mxu0 }
 0x3df   :  { %940 = vmatmul.mubr.bf16.vlgmr.msra.gmra.mrb[0].mxu1 %v493_v2 }
 0x4b2   :  { %v599_v7 = vpop.f32.mrb[0].mxu1 }
 0x4b3   :  { %v600_v8 = vadd.f32 %v808_v6, %v599_v7  ;;  %v941_v9 = vpop.f32.mrb[1].mxu1 }
 0x4b4   :  { %v602_v10 = vpop.f32.mrb[2].mxu1 }
 0x4b5   :  { %v605_v11 = vmax.f32 %v600_v8, 0.0  ;;  %v942_v12 = vpop.f32.mrb[3].mxu1 }
 0x4b7   :  { %v606_v13 = vpack.c.bf16 %v605_v11, %v605_v11 }
 0x4b9   :  { %960 = vmatmul.mubr.bf16.vlgmr.msra.gmra.mrb[4].mxu0 %v606_v13 }
 0x58c   :  { %v714_v17 = vpop.f32.mrb[4].mxu0 }
 0x58d   :  { %v715_v18 = vadd.f32 %v818_v16, %v714_v17  ;;  %v961_v19 = vpop.f32.mrb[5].mxu0 }
 0x58e   :  { %v717_v20 = vpop.f32.mrb[6].mxu0 }
 0x58f   :  { %v962_v21 = vpop.f32.mrb[7].mxu0  ;;  %v723_v22 = vsel %vm722_vm3, %v715_v18, -1e+30 }
 0x590   :  { %724 = vmax.xlane.f32.xlu0 %v723_v22 }
 0x61d   :  { %v725_v23 = vpop.xlane.xlu0 %724 }
 0x61e   :  { %v726_v24 = vsub.f32 %v723_v22, %v725_v23 }
 0x620   :  { %v727_v25 = vmul.f32 1.442695, %v726_v24 }
 0x622   :  { %1039 = vpow2.f32 %v727_v25 }
 0x62c   :  { %v1040_v26 = vpop.eup %1039 }
 0x62d   :  { %729 = vadd.xlane.f32.xlu0 %v1040_v26 }
 0x62e   :  { %1186 = shalt.err (!%p1183_p11)
}
 0x62f   :  { %s1187_s18 = scalar_lea.hbm %s1518_s9, 128 }
 0x630   :  { %p1188_p12 = scmp.ne.s32.totalorder %s1518_s9, %s1187_s18  ;;  %p1191_p13 = scmp.lt.u32.totalorder %s1187_s18, %s1518_s9 }
 0x632   :  { %p1193_p0 = pnand %p1191_p13, %p1188_p12 }
 0x634   :  { %1196 = shalt.err (!%p1193_p0)
}
 0x635   :  { %744 = dma.vmem_to_hbm [thread:$0]  %s742_s13, 128, %s1518_s9, [#allocation4]  }
 0x636   :  { %s1271_s30 = smov [#allocation14]  }
 0x637   :  { %s751_s5 = sshll.u32 %s1271_s30, 4  ;;  %s752_s5 = int_to_ptr.vmem [resolvable:$true] %s751_s5 }
 0x638   :  { %s1197_s16 = scalar_lea.vmem %s752_s5, 128  ;;  %p1202_p2 = scmp.lt.s32.totalorder %s752_s5, %s752_s5 }
 0x639   :  { %p1198_p1 = scmp.ne.s32.totalorder %s752_s5, %s1197_s16  ;;  %p1203_p3 = scmp.lt.s32.totalorder %s1197_s16, %s1197_s16 }
 0x63b   :  { %p1204_p4 = por %p1203_p3, %p1202_p2 }
 0x63d   :  { %p1205_p5 = pnand %p1204_p4, %p1198_p1 }
 0x6ba   :  { %v730_v27 = vpop.xlane.xlu0 %729 }
 0x6bb   :  { %1041 = vlog2.f32 %v730_v27 }
 0x6c5   :  { %v1042_v28 = vpop.eup %1041 }
 0x6c6   :  { %v732_v29 = vmul.f32 0.6931472, %v1042_v28 }
 0x6c8   :  { %v733_v30 = vsub.f32 %v726_v24, %v732_v29 }
 0x6ca   :  { %734 = vst [vmem:[#allocation14] sm:$0xff] %v733_v30 }
 0x6cb   :  { %1208 = shalt.err (!%p1205_p5)
}
 0x6cc   :  { %s1209_s9 = scalar_lea.hbm %s1519_s10, 128 }
 0x6cd   :  { %p1210_p6 = scmp.ne.s32.totalorder %s1519_s10, %s1209_s9  ;;  %p1213_p7 = scmp.lt.u32.totalorder %s1209_s9, %s1519_s10 }
 0x6cf   :  { %p1215_p8 = pnand %p1213_p7, %p1210_p6 }
 0x6d1   :  { %1218 = shalt.err (!%p1215_p8)
}
 0x6d2   :  { %754 = dma.vmem_to_hbm [thread:$0]  %s752_s5, 128, %s1519_s10, [#allocation15]  }
 0x6d3   :  { %1239 = dma.done.wait [#allocation4], 128  }
 0x6d4   :  { %1240 = vsyncadd [#allocation4], 4294967168 }
 0x6d5   :  { %1241 = dma.done.wait [#allocation15], 128  }
 0x6d6   :  { %1242 = vsyncadd [#allocation15], 4294967168 }
 0x6d7   :  { %761 = vsyncpa [#allocation3], 1 }
 0x6d8   :  { %762 = vsyncpa [#allocation6], 1 }
 0x6d9   :  { %763 = vsyncpa [#allocation9], 1 }
 0x6da   :  { %764 = vsyncpa [#allocation12], 1 }
 0x6db   :  { %765 = vsyncpa [#allocation4], 1 }
 0x6dc   :  { %766 = vsyncpa [#allocation15], 1 }

</bundles_post_ra>
